<compile_context>
chip_gen: v6e
topology: v6e:2x2x1
jax: 0.10.0
libtpu: 0.0.40
codegen_flags: <defaults>
</compile_context>

<pallas_src>
import jax
import jax.numpy as jnp
from jax.experimental import pallas as pl
from jax.experimental.pallas import tpu as pltpu

EPS = 1e-5


def _round_up(x, m):
    return ((x + m - 1) // m) * m


def _make_kernel(eps):
    def kernel(x_ref, wb_ref, o_ref):
        # x_ref: (TILE_R, N);  wb_ref: (TILE_R, 2) f32  ([:,0]=weight, [:,1]=bias)
        x = x_ref[...].astype(jnp.float32)
        u = jnp.mean(x, axis=-1, keepdims=True)           # (TILE_R, 1)
        xc = x - u                                        # centered tile, reused below
        s = jnp.mean(xc * xc, axis=-1, keepdims=True)     # biased variance
        inv = jax.lax.rsqrt(s + eps)                      # (TILE_R, 1)
        wb = wb_ref[...]
        scale = wb[:, 0:1] * inv                          # (TILE_R, 1)
        # out = w * (x - u) * inv + b  ==  xc * scale + b   (x dead after centering)
        o_ref[...] = (xc * scale + wb[:, 1:2]).astype(o_ref.dtype)

    return kernel


def _plan_tiles(rows, n, dtype):
    """Pick (tile_r, padded_rows, vmem_limit_bytes).

    Per-row live bytes per grid step:
      2x double-buffered input block  (x.dtype)
      2x double-buffered output block (x.dtype)
      ~2x (TILE_R, N) f32 temporaries inside the body (x upcast + centered tile)
    """
    dtype_bytes = jnp.dtype(dtype).itemsize
    try:
        capacity = int(pltpu.get_tpu_info().vmem_capacity_bytes)
    except Exception:
        capacity = 64 << 20  # conservative (v7x-sized) fallback

    budget = int(capacity * 0.6)  # ~38 MiB on v7x (64 MiB), ~76 MiB on v5e/v6e (128 MiB)
    bytes_per_row = n * (4 * dtype_bytes + 2 * 4)

    tile_r = max(8, (budget // max(bytes_per_row, 1)) // 8 * 8)
    tile_r = min(tile_r, _round_up(rows, 8))

    # v7x megacore: prefer >= 2 grid steps so both TensorCores get work.
    if rows > 8 and -(-rows // tile_r) < 2:
        tile_r = max(8, _round_up(-(-rows // 2), 8))

    padded_rows = _round_up(rows, tile_r)

    used = tile_r * bytes_per_row
    vmem_limit = int(min(capacity - (4 << 20), max(used + (8 << 20), 32 << 20)))
    return tile_r, padded_rows, vmem_limit


def layer_norm_channel_1d(x, weight, bias, eps=EPS):
    """x: [B, C, N]; weight, bias: [C]. Returns [B, C, N]."""
    B, C, N = x.shape
    rows = B * C
    x2 = x.reshape(rows, N)

    # Row r = b*C + c  ->  parameter index c = r % C, so tiling over B matches.
    w_rows = jnp.tile(weight.astype(jnp.float32), (B,))
    b_rows = jnp.tile(bias.astype(jnp.float32), (B,))
    wb = jnp.stack([w_rows, b_rows], axis=-1)            # (rows, 2) f32

    tile_r, padded_rows, vmem_limit = _plan_tiles(rows, N, x.dtype)
    if padded_rows != rows:
        pad = padded_rows - rows
        x2 = jnp.pad(x2, ((0, pad), (0, 0)))
        wb = jnp.pad(wb, ((0, pad), (0, 0)))

    grid = (padded_rows // tile_r,)

    out = pl.pallas_call(
        _make_kernel(float(eps)),
        out_shape=jax.ShapeDtypeStruct((padded_rows, N), x.dtype),
        grid_spec=pltpu.PrefetchScalarGridSpec(
            num_scalar_prefetch=0,
            grid=grid,
            in_specs=[
                pl.BlockSpec((tile_r, N), lambda r: (r, 0)),
                pl.BlockSpec((tile_r, 2), lambda r: (r, 0)),
            ],
            out_specs=pl.BlockSpec((tile_r, N), lambda r: (r, 0)),
        ),
        compiler_params=pltpu.CompilerParams(
            dimension_semantics=("parallel",),
            vmem_limit_bytes=vmem_limit,
        ),
    )(x2, wb)

    if padded_rows != rows:
        out = out[:rows]
    return out.reshape(B, C, N)


def _reference(x, weight, bias, eps=EPS):
    u = jnp.mean(x, axis=-1, keepdims=True)
    s = jnp.mean((x - u) ** 2, axis=-1, keepdims=True)
    y = (x - u) / jnp.sqrt(s + eps)
    return weight[:, None] * y + bias[:, None]


if __name__ == "__main__":
    B, C, N = 2, 4, 16  # num_channels = C = 4

    key = jax.random.PRNGKey(0)
    x = jax.random.normal(key, (B, C, N), dtype=jnp.float32)

    # Parameters as in the module's __init__: weight = ones(C), bias = ones(C)
    weight = jnp.ones((C,), dtype=jnp.float32)
    bias = jnp.ones((C,), dtype=jnp.float32)

    out = layer_norm_channel_1d(x, weight, bias)
    out = jax.block_until_ready(out)

    ref = _reference(x, weight, bias)
    assert out.shape == (B, C, N)
    assert jnp.allclose(out, ref, atol=1e-5, rtol=1e-5), (
        f"max abs err = {jnp.max(jnp.abs(out - ref))}"
    )

    print("KERNEL_OK")
</pallas_src>

<mosaic_0001>
module attributes {stable_mosaic.version = 11 : i64} {
  func.func @kernel(%arg0: i32, %arg1: memref<8x16xf32, #tpu.memory_space<vmem>>, %arg2: memref<8x2xf32, #tpu.memory_space<vmem>>, %arg3: memref<8x16xf32, #tpu.memory_space<vmem>>) attributes {dimension_semantics = [#tpu.dimension_semantics<parallel>], iteration_bounds = array<i64: 1>, scalar_prefetch = 0 : i64, scratch_operands = 0 : i64, tpu.core_type = #tpu.core_type<tc>, window_params = [{transform_indices = @transform_0, window_bounds = array<i64: 8, 16>}, {transform_indices = @transform_1, window_bounds = array<i64: 8, 2>}, {transform_indices = @transform_2, window_bounds = array<i64: 8, 16>}]} {
    %c0 = arith.constant 0 : index
    %c0_0 = arith.constant 0 : index
    %0 = vector.load %arg1[%c0, %c0_0] : memref<8x16xf32, #tpu.memory_space<vmem>>, vector<8x16xf32>
    %cst = arith.constant dense<0.000000e+00> : vector<8xf32>
    %1 = vector.multi_reduction <add>, %0, %cst [1] : vector<8x16xf32> to vector<8xf32>
    %2 = vector.shape_cast %1 : vector<8xf32> to vector<8x1xf32>
    %cst_1 = arith.constant 1.600000e+01 : f32
    %3 = vector.broadcast %cst_1 : f32 to vector<8x1xf32>
    %4 = arith.divf %2, %3 : vector<8x1xf32>
    %5 = vector.broadcast %4 : vector<8x1xf32> to vector<8x16xf32>
    %6 = arith.subf %0, %5 : vector<8x16xf32>
    %7 = arith.mulf %6, %6 : vector<8x16xf32>
    %cst_2 = arith.constant dense<0.000000e+00> : vector<8xf32>
    %8 = vector.multi_reduction <add>, %7, %cst_2 [1] : vector<8x16xf32> to vector<8xf32>
    %9 = vector.shape_cast %8 : vector<8xf32> to vector<8x1xf32>
    %cst_3 = arith.constant 1.600000e+01 : f32
    %10 = vector.broadcast %cst_3 : f32 to vector<8x1xf32>
    %11 = arith.divf %9, %10 : vector<8x1xf32>
    %cst_4 = arith.constant 9.99999974E-6 : f32
    %12 = vector.broadcast %cst_4 : f32 to vector<8x1xf32>
    %13 = arith.addf %11, %12 : vector<8x1xf32>
    %14 = math.rsqrt %13 : vector<8x1xf32>
    %c0_5 = arith.constant 0 : index
    %c0_6 = arith.constant 0 : index
    %15 = vector.load %arg2[%c0_5, %c0_6] : memref<8x2xf32, #tpu.memory_space<vmem>>, vector<8x2xf32>
    %16 = vector.extract_strided_slice %15 {offsets = [0, 0], sizes = [8, 1], strides = [1, 1]} : vector<8x2xf32> to vector<8x1xf32>
    %17 = arith.mulf %16, %14 : vector<8x1xf32>
    %18 = vector.broadcast %17 : vector<8x1xf32> to vector<8x16xf32>
    %19 = arith.mulf %6, %18 : vector<8x16xf32>
    %20 = vector.extract_strided_slice %15 {offsets = [0, 1], sizes = [8, 1], strides = [1, 1]} : vector<8x2xf32> to vector<8x1xf32>
    %21 = vector.broadcast %20 : vector<8x1xf32> to vector<8x16xf32>
    %22 = arith.addf %19, %21 : vector<8x16xf32>
    %c0_7 = arith.constant 0 : index
    %c0_8 = arith.constant 0 : index
    %23 = vector.load %arg3[%c0_7, %c0_8] : memref<8x16xf32, #tpu.memory_space<vmem>>, vector<8x16xf32>
    tpu.vector_store %arg3[%c0_7, %c0_8], %22 {strides = array<i32>} : memref<8x16xf32, #tpu.memory_space<vmem>>, vector<8x16xf32>,
    return
  }
  func.func @transform_0(%arg0: i32) -> (i32, i32) {
    %c0_i32 = arith.constant 0 : i32
    %c0_i32_0 = arith.constant 0 : i32
    return %arg0, %c0_i32 : i32, i32
  }
  func.func @transform_1(%arg0: i32) -> (i32, i32) {
    %c0_i32 = arith.constant 0 : i32
    %c0_i32_0 = arith.constant 0 : i32
    return %arg0, %c0_i32 : i32, i32
  }
  func.func @transform_2(%arg0: i32) -> (i32, i32) {
    %c0_i32 = arith.constant 0 : i32
    %c0_i32_0 = arith.constant 0 : i32
    return %arg0, %c0_i32 : i32, i32
  }
}

</mosaic_0001>

<bundles_post_ra>
// kernel: tpu_custom_call.1
= control target key start
LH: loop header
LB: loop body
LE: loop exit
PB: predicated region body
PF: predicated region fallthrough
CT: control target
= control target key end

     0   :  { %vm13_vm0 = vcmask 130048   ;;  %s116_s0 = inlined_call_operand.vmem [shape: f32[8,16], index: 0, kind: input, shape index: {}]   ;;  %s117_s1 = inlined_call_operand.vmem [shape: f32[8,2], index: 1, kind: input, shape index: {}]   ;;  %s118_s2 = inlined_call_operand.hbm [shape: f32[8,16], index: 2, kind: output, shape index: {}]  }
   0x1   :  { %v12_v0 = vld [vmem:[%s116_s0] sm:$0xff] }
   0x2   :  { %7 = vsyncpa [#allocation3], 0  ;;  %v14_v1 = vsel %vm13_vm0, %v12_v0, 0.0  ;;  %v86_v7 = vmov 0   ;;  %v87_v8 = vmov 1   ;;  %v27_v12 = vld [vmem:[%s117_s1] sm:$0xff] }
   0x3   :  { %15 = vadd.xlane.f32.xlu0 %v14_v1  ;;  %59 = vset.pattern.permute.xlu1 %v86_v7  ;;  %s88_s12 = smov [#allocation2]  }
   0x4   :  { %61 = vset.pattern.permute.xlu0 %v87_v8  ;;  %s48_s13 = sshll.u32 %s88_s12, 4  ;;  %s49_s13 = int_to_ptr.vmem [resolvable:$true] %s48_s13 }
   0x5   :  { %s64_s14 = scalar_lea.vmem %s49_s13, 128  ;;  %p69_p1 = scmp.lt.s32.totalorder %s49_s13, %s49_s13 }
   0x6   :  { %p65_p0 = scmp.ne.s32.totalorder %s49_s13, %s64_s14  ;;  %p70_p2 = scmp.lt.s32.totalorder %s64_s14, %s64_s14 }
   0x8   :  { %p71_p3 = por %p70_p2, %p69_p1 }
   0xa   :  { %p72_p4 = pnand %p71_p3, %p65_p0 }
  0x8c   :  { %v16_v2 = vpop.xlane.xlu0 %15 }
  0x8d   :  { %v18_v3 = vmul.f32 0.0625, %v16_v2 }
  0x8f   :  { %v19_v4 = vsub.f32 %v12_v0, %v18_v3 }
  0x91   :  { %v20_v5 = vmul.f32 %v19_v4, %v19_v4 }
  0x93   :  { %v21_v6 = vsel %vm13_vm0, %v20_v5, 0.0 }
  0x94   :  { %22 = vadd.xlane.f32.xlu0 %v21_v6 }
 0x11d   :  { %v23_v9 = vpop.xlane.xlu0 %22 }
 0x11e   :  { %v24_v10 = vmul.f32 0.0625, %v23_v9 }
 0x120   :  { %v25_v11 = vadd.f32 1e-05, %v24_v10 }
 0x122   :  { %62 = vrsqrt.f32 %v25_v11 }
 0x12f   :  { %v63_v13 = vpop.eup %62 }
 0x130   :  { %v28_v14 = vmul.f32 %v63_v13, %v27_v12 }
 0x132   :  { %31 = vperm.xlu1 %59, %v28_v14  }
 0x136   :  { %60 = vset.pattern.permute.xlu1 %v87_v8 }
 0x137   :  { %37 = vperm.xlu1 %60, %v27_v12  }
 0x1ad   :  { %v32_v15 = vpop.permute.xlu1 %31 }
 0x1ae   :  { %v34_v16 = vmul.f32 %v32_v15, %v19_v4 }
 0x1b2   :  { %v38_v17 = vpop.permute.xlu1 %37 }
 0x1b3   :  { %v40_v18 = vadd.f32 %v38_v17, %v34_v16 }
 0x1b5   :  { %41 = vst.msk [vmem:[#allocation2] sm:$0xff] %vm13_vm0, %v40_v18 }
 0x1b6   :  { %75 = shalt.err (!%p72_p4)
}
 0x1b7   :  { %51 = dma.vmem_to_hbm [thread:$0]  %s49_s13, 128, %s118_s2, [#allocation3]  }
 0x1b8   :  { %84 = dma.done.wait [#allocation3], 128  }
 0x1b9   :  { %85 = vsyncadd [#allocation3], 4294967168 }
 0x1ba   :  { %55 = vsyncpa [#allocation3], 1 }

</bundles_post_ra>
